<compile_context>
chip_gen: v7x
topology: tpu7x:2x2x1
jax: 0.10.0
libtpu: 0.0.40
codegen_flags: <defaults>
</compile_context>

<pallas_src>
import functools

import jax
import jax.numpy as jnp
from jax.experimental import pallas as pl
from jax.experimental.pallas import tpu as pltpu


def _psinn_kernel(num_hidden, add_constant, d, compute_dtype,
                  x_ref, w_in_ref, *refs):
    """Feature-major kernel.

    x_ref:    (d, TB)           input tile, batch on the lane axis
    w_in_ref: (h0, d)           input layer (transposed, no bias)
    refs:     [w_h0^T (h1,h0), b_h0^T (h1,1), ..., w_out^T (n_psi,h_last),
               b_out^T (n_psi,1), out_ref (out_dim, TB)]
    """
    out_ref = refs[-1]
    w_out_ref = refs[-3]
    b_out_ref = refs[-2]
    hidden_refs = refs[: 2 * num_hidden]

    x_t = x_ref[...].astype(jnp.float32)                       # (d, TB)

    # --- input layer (bias-free). For tiny d (K<=8) a K-dim MXU contraction
    # wastes a full MXU pass + result-FIFO pop; do it as VPU broadcasts.
    w_in_t = w_in_ref[...].astype(jnp.float32)                  # (h0, d)
    if d <= 8:
        psi = w_in_t[:, 0:1] * x_t[0:1, :]                      # (h0, TB)
        for k in range(1, d):
            psi = psi + w_in_t[:, k:k + 1] * x_t[k:k + 1, :]
    else:
        psi = jnp.dot(w_in_t.astype(compute_dtype), x_t.astype(compute_dtype),
                      preferred_element_type=jnp.float32)

    # --- residual tanh hidden layers: psi = psi + tanh(W^T @ psi + b^T)
    for h in range(num_hidden):
        w_t = hidden_refs[2 * h][...]                            # (hj, hi)
        b_t = hidden_refs[2 * h + 1][...]                        # (hj, 1)
        z = jnp.dot(w_t.astype(compute_dtype), psi.astype(compute_dtype),
                    preferred_element_type=jnp.float32) + b_t
        psi = psi + jnp.tanh(z)

    # --- output layer: (n_psi, h_last) @ (h_last, TB) + (n_psi, 1)
    psi_out = (jnp.dot(w_out_ref[...].astype(compute_dtype),
                       psi.astype(compute_dtype),
                       preferred_element_type=jnp.float32)
               + b_out_ref[...])                                 # (n_psi, TB)

    # --- direct slice stores (no lane-offset concatenate / XLU shuffles);
    # every store is full-width on the 128-lane axis.
    row = 0
    if add_constant:
        out_ref[0:1, :] = jnp.ones((1, out_ref.shape[1]), out_ref.dtype)
        row = 1
    out_ref[row:row + d, :] = x_t.astype(out_ref.dtype)
    out_ref[row + d:, :] = psi_out.astype(out_ref.dtype)


def _choose_block_batch(n, requested):
    """Batch tile: multiple of 128 (lane axis), >=2 grid steps when possible."""
    bb = max(128, (min(requested, max(n, 128)) // 128) * 128)
    if pl.cdiv(n, bb) < 2 and n > 128:
        bb = max(128, ((pl.cdiv(n, 2) + 127) // 128) * 128)
    return bb


def psinn_forward(x, params, *, add_constant=True, block_batch=512,
                  compute_dtype=jnp.float32):
    """x: (N, inputs_dim). Returns (N, add_constant + inputs_dim + n_psi).

    compute_dtype=jnp.bfloat16 uses bf16 MXU operands (f32 accumulation) —
    recommended on v6e/v7x when strict f32 parity is not required.
    """
    N, d = x.shape
    w_in = params["w_in"]                    # (d, h0)
    hidden = params["hidden"]                # list of (W (hi, hj), b (1, hj))
    w_out = params["w_out"]                  # (h_last, n_psi)
    b_out = params["b_out"]                  # (1, n_psi)
    n_psi = w_out.shape[1]
    out_dim = int(add_constant) + d + n_psi
    num_hidden = len(hidden)
    h_sizes = [w_in.shape[1]] + [w.shape[1] for (w, _) in hidden]

    # Feature-major operands: batch on the 128-lane axis everywhere.
    x_t = x.T                                           # (d, N)
    w_in_t = w_in.T                                     # (h0, d)
    hidden_t = [(w.T, b.T) for (w, b) in hidden]        # ((hj, hi), (hj, 1))
    w_out_t = w_out.T                                   # (n_psi, h_last)
    b_out_t = b_out.T                                   # (n_psi, 1)

    block_batch = _choose_block_batch(N, block_batch)
    grid_n = pl.cdiv(N, block_batch)
    n_pad = grid_n * block_batch
    if n_pad != N:
        # zero-pad so ragged tiles never feed garbage into tanh/matmul
        x_t = jnp.pad(x_t, ((0, 0), (0, n_pad - N)))

    def full_spec(a):
        # Constant-index weight block (whole array resident in VMEM).
        # NOTE: for large hidden sizes, single-buffer these (pl.Buffered(1))
        # or stage via memory_space=pl.ANY to halve the VMEM footprint.
        nd = a.ndim
        return pl.BlockSpec(a.shape, lambda i, _nd=nd: (0,) * _nd)

    in_specs = [pl.BlockSpec((d, block_batch), lambda i: (0, i)),
                full_spec(w_in_t)]
    args = [x_t, w_in_t]
    for (w_t, b_t) in hidden_t:
        in_specs += [full_spec(w_t), full_spec(b_t)]
        args += [w_t, b_t]
    in_specs += [full_spec(w_out_t), full_spec(b_out_t)]
    args += [w_out_t, b_out_t]

    # Scheduling hint so XLA overlaps this tiny call with surrounding ops.
    flops = 2 * N * (d * h_sizes[0]
                     + sum(hi * hj for hi, hj in zip(h_sizes[:-1], h_sizes[1:]))
                     + h_sizes[-1] * n_psi)
    transcendentals = N * sum(h_sizes[1:])
    bytes_accessed = int(x.size * x.dtype.itemsize
                         + sum(int(a.size) * a.dtype.itemsize for a in args[1:])
                         + N * out_dim * x.dtype.itemsize)
    cost = pl.CostEstimate(flops=int(flops),
                           transcendentals=int(transcendentals),
                           bytes_accessed=bytes_accessed)

    kernel = functools.partial(_psinn_kernel, num_hidden, add_constant, d,
                               compute_dtype)
    out_t = pl.pallas_call(
        kernel,
        out_shape=jax.ShapeDtypeStruct((out_dim, n_pad), x.dtype),
        grid=(grid_n,),
        in_specs=in_specs,
        out_specs=pl.BlockSpec((out_dim, block_batch), lambda i: (0, i)),
        compiler_params=pltpu.CompilerParams(
            dimension_semantics=("parallel",)),
        cost_estimate=cost,
    )(*args)
    return out_t[:, :N].T


def psinn_reference(x, params, add_constant=True):
    psi = x @ params["w_in"]
    for w, b in params["hidden"]:
        psi = psi + jnp.tanh(psi @ w + b)
    out = psi @ params["w_out"] + params["b_out"]
    pieces = []
    if add_constant:
        pieces.append(jnp.ones_like(x[:, :1]))
    pieces.append(x)
    pieces.append(out)
    return jnp.concatenate(pieces, axis=-1)


def init_params(key, inputs_dim, layer_sizes, n_psi_train):
    """Deterministic synthetic weights, stored as (in, out)."""
    keys = jax.random.split(key, 2 + 2 * len(layer_sizes))
    k = iter(keys)
    params = {}
    params["w_in"] = 0.1 * jax.random.normal(
        next(k), (inputs_dim, layer_sizes[0]), jnp.float32)
    hidden = []
    for fin, fout in zip(layer_sizes[:-1], layer_sizes[1:]):
        w = 0.1 * jax.random.normal(next(k), (fin, fout), jnp.float32)
        b = 0.1 * jax.random.normal(next(k), (1, fout), jnp.float32)
        hidden.append((w, b))
    params["hidden"] = hidden
    params["w_out"] = 0.1 * jax.random.normal(
        next(k), (layer_sizes[-1], n_psi_train), jnp.float32)
    params["b_out"] = 0.1 * jax.random.normal(
        next(k), (1, n_psi_train), jnp.float32)
    return params


if __name__ == "__main__":
    inputs_dim = 1
    layer_sizes = [64, 64]
    n_psi_train = 22
    batch = 256

    key = jax.random.PRNGKey(0)
    kx, kp = jax.random.split(key)
    x = jax.random.normal(kx, (batch, inputs_dim), jnp.float32)
    params = init_params(kp, inputs_dim, layer_sizes, n_psi_train)

    ref = psinn_reference(x, params, add_constant=True)

    # f32 MXU path: bit-faithful to the torch module
    out = psinn_forward(x, params, add_constant=True, block_batch=512)
    out = jax.block_until_ready(out)
    assert out.shape == (batch, 1 + inputs_dim + n_psi_train), out.shape
    assert jnp.allclose(out, ref, atol=1e-5, rtol=1e-5), (
        float(jnp.max(jnp.abs(out - ref))))

    # bf16-operand MXU path (v6e/v7x friendly), f32 accumulation
    out_bf16 = psinn_forward(x, params, add_constant=True, block_batch=512,
                             compute_dtype=jnp.bfloat16)
    out_bf16 = jax.block_until_ready(out_bf16)
    assert jnp.allclose(out_bf16, ref, atol=3e-2, rtol=3e-2), (
        float(jnp.max(jnp.abs(out_bf16 - ref))))

    print("KERNEL_OK")
</pallas_src>

<mosaic_0001>
module attributes {stable_mosaic.version = 11 : i64} {
  func.func @_psinn_kernel(%arg0: i32, %arg1: memref<1x128xf32, #tpu.memory_space<vmem>>, %arg2: memref<64x1xf32, #tpu.memory_space<vmem>>, %arg3: memref<64x64xf32, #tpu.memory_space<vmem>>, %arg4: memref<64x1xf32, #tpu.memory_space<vmem>>, %arg5: memref<22x64xf32, #tpu.memory_space<vmem>>, %arg6: memref<22x1xf32, #tpu.memory_space<vmem>>, %arg7: memref<24x128xf32, #tpu.memory_space<vmem>>) attributes {dimension_semantics = [#tpu.dimension_semantics<parallel>], iteration_bounds = array<i64: 2>, scalar_prefetch = 0 : i64, scratch_operands = 0 : i64, tpu.core_type = #tpu.core_type<tc>, window_params = [{transform_indices = @transform_0, window_bounds = array<i64: 1, 128>}, {pipeline_mode = #tpu.pipeline_mode<synchronous>, transform_indices = @transform_1, window_bounds = array<i64: 64, 1>}, {pipeline_mode = #tpu.pipeline_mode<synchronous>, transform_indices = @transform_2, window_bounds = array<i64: 64, 64>}, {pipeline_mode = #tpu.pipeline_mode<synchronous>, transform_indices = @transform_3, window_bounds = array<i64: 64, 1>}, {pipeline_mode = #tpu.pipeline_mode<synchronous>, transform_indices = @transform_4, window_bounds = array<i64: 22, 64>}, {pipeline_mode = #tpu.pipeline_mode<synchronous>, transform_indices = @transform_5, window_bounds = array<i64: 22, 1>}, {transform_indices = @transform_6, window_bounds = array<i64: 24, 128>}]} {
    %c0 = arith.constant 0 : index
    %c0_0 = arith.constant 0 : index
    %0 = vector.load %arg1[%c0, %c0_0] : memref<1x128xf32, #tpu.memory_space<vmem>>, vector<1x128xf32>
    %c0_1 = arith.constant 0 : index
    %c0_2 = arith.constant 0 : index
    %1 = vector.load %arg2[%c0_1, %c0_2] : memref<64x1xf32, #tpu.memory_space<vmem>>, vector<64x1xf32>
    %2 = vector.broadcast %1 : vector<64x1xf32> to vector<64x128xf32>
    %3 = vector.broadcast %0 : vector<1x128xf32> to vector<64x128xf32>
    %4 = arith.mulf %2, %3 : vector<64x128xf32>
    %c0_3 = arith.constant 0 : index
    %c0_4 = arith.constant 0 : index
    %5 = vector.load %arg3[%c0_3, %c0_4] : memref<64x64xf32, #tpu.memory_space<vmem>>, vector<64x64xf32>
    %c0_5 = arith.constant 0 : index
    %c0_6 = arith.constant 0 : index
    %6 = vector.load %arg4[%c0_5, %c0_6] : memref<64x1xf32, #tpu.memory_space<vmem>>, vector<64x1xf32>
    %cst = arith.constant dense<0.000000e+00> : vector<64x128xf32>
    %7 = tpu.matmul %5, %4, %cst {dimension_numbers = #tpu.dot_dimension_numbers<[1], [0], [0], [1], [0, 0, 1, 1], [], []>} : vector<64x64xf32>, vector<64x128xf32>, vector<64x128xf32> -> vector<64x128xf32>
    %8 = vector.broadcast %6 : vector<64x1xf32> to vector<64x128xf32>
    %9 = arith.addf %7, %8 : vector<64x128xf32>
    %10 = math.tanh %9 : vector<64x128xf32>
    %11 = arith.addf %4, %10 : vector<64x128xf32>
    %c0_7 = arith.constant 0 : index
    %c0_8 = arith.constant 0 : index
    %12 = vector.load %arg5[%c0_7, %c0_8] : memref<22x64xf32, #tpu.memory_space<vmem>>, vector<22x64xf32>
    %cst_9 = arith.constant dense<0.000000e+00> : vector<22x128xf32>
    %13 = tpu.matmul %12, %11, %cst_9 {dimension_numbers = #tpu.dot_dimension_numbers<[1], [0], [0], [1], [0, 0, 1, 1], [], []>} : vector<22x64xf32>, vector<64x128xf32>, vector<22x128xf32> -> vector<22x128xf32>
    %c0_10 = arith.constant 0 : index
    %c0_11 = arith.constant 0 : index
    %14 = vector.load %arg6[%c0_10, %c0_11] : memref<22x1xf32, #tpu.memory_space<vmem>>, vector<22x1xf32>
    %15 = vector.broadcast %14 : vector<22x1xf32> to vector<22x128xf32>
    %16 = arith.addf %13, %15 : vector<22x128xf32>
    %cst_12 = arith.constant 1.000000e+00 : f32
    %17 = vector.broadcast %cst_12 : f32 to vector<1x128xf32>
    %c0_13 = arith.constant 0 : index
    %c0_14 = arith.constant 0 : index
    %18 = vector.load %arg7[%c0_13, %c0_14] : memref<24x128xf32, #tpu.memory_space<vmem>>, vector<1x128xf32>
    tpu.vector_store %arg7[%c0_13, %c0_14], %17 {strides = array<i32>} : memref<24x128xf32, #tpu.memory_space<vmem>>, vector<1x128xf32>,
    %c1 = arith.constant 1 : index
    %c0_15 = arith.constant 0 : index
    %19 = vector.load %arg7[%c1, %c0_15] : memref<24x128xf32, #tpu.memory_space<vmem>>, vector<1x128xf32>
    tpu.vector_store %arg7[%c1, %c0_15], %0 {strides = array<i32>} : memref<24x128xf32, #tpu.memory_space<vmem>>, vector<1x128xf32>,
    %c2 = arith.constant 2 : index
    %c0_16 = arith.constant 0 : index
    %20 = vector.load %arg7[%c2, %c0_16] : memref<24x128xf32, #tpu.memory_space<vmem>>, vector<22x128xf32>
    tpu.vector_store %arg7[%c2, %c0_16], %16 {strides = array<i32>} : memref<24x128xf32, #tpu.memory_space<vmem>>, vector<22x128xf32>,
    return
  }
  func.func @transform_0(%arg0: i32) -> (i32, i32) {
    %c0_i32 = arith.constant 0 : i32
    %c0_i32_0 = arith.constant 0 : i32
    return %c0_i32, %arg0 : i32, i32
  }
  func.func @transform_1(%arg0: i32) -> (i32, i32) {
    %c0_i32 = arith.constant 0 : i32
    %c0_i32_0 = arith.constant 0 : i32
    %c0_i32_1 = arith.constant 0 : i32
    return %c0_i32, %c0_i32_0 : i32, i32
  }
  func.func @transform_2(%arg0: i32) -> (i32, i32) {
    %c0_i32 = arith.constant 0 : i32
    %c0_i32_0 = arith.constant 0 : i32
    %c0_i32_1 = arith.constant 0 : i32
    return %c0_i32, %c0_i32_0 : i32, i32
  }
  func.func @transform_3(%arg0: i32) -> (i32, i32) {
    %c0_i32 = arith.constant 0 : i32
    %c0_i32_0 = arith.constant 0 : i32
    %c0_i32_1 = arith.constant 0 : i32
    return %c0_i32, %c0_i32_0 : i32, i32
  }
  func.func @transform_4(%arg0: i32) -> (i32, i32) {
    %c0_i32 = arith.constant 0 : i32
    %c0_i32_0 = arith.constant 0 : i32
    %c0_i32_1 = arith.constant 0 : i32
    return %c0_i32, %c0_i32_0 : i32, i32
  }
  func.func @transform_5(%arg0: i32) -> (i32, i32) {
    %c0_i32 = arith.constant 0 : i32
    %c0_i32_0 = arith.constant 0 : i32
    %c0_i32_1 = arith.constant 0 : i32
    return %c0_i32, %c0_i32_0 : i32, i32
  }
  func.func @transform_6(%arg0: i32) -> (i32, i32) {
    %c0_i32 = arith.constant 0 : i32
    %c0_i32_0 = arith.constant 0 : i32
    return %c0_i32, %arg0 : i32, i32
  }
}

</mosaic_0001>

<bundles_post_ra>
// kernel: tpu_custom_call.1
= control target key start
LH: loop header
LB: loop body
LE: loop exit
PB: predicated region body
PF: predicated region fallthrough
CT: control target
= control target key end

     0   :  { %11 = vsyncpa [#allocation3], 0  ;;  %s1254_s0 = inlined_call_operand.vmem [shape: f32[1,256], index: 0, kind: input, shape index: {}]   ;;  %s1255_s1 = inlined_call_operand.vmem [shape: f32[64,1], index: 1, kind: input, shape index: {}]   ;;  %s1256_s2 = inlined_call_operand.vmem [shape: f32[64,64], index: 2, kind: input, shape index: {}]   ;;  %s1257_s3 = inlined_call_operand.vmem [shape: f32[64,1], index: 3, kind: input, shape index: {}]   ;;  %s1258_s4 = inlined_call_operand.vmem [shape: f32[22,64], index: 4, kind: input, shape index: {}]   ;;  %s1259_s5 = inlined_call_operand.vmem [shape: f32[22,1], index: 5, kind: input, shape index: {}]   ;;  %s1260_s6 = inlined_call_operand.hbm [shape: f32[24,256], index: 6, kind: output, shape index: {}]  }
   0x1   :  { %13 = vsyncpa [#allocation3 + $0x1], 0  ;;  %s996_s21 = smov 0   ;;  %s998_s22 = smov 0  }
   0x2   :  { %s1000_s23 = smov 0   ;;  %s1002_s24 = smov 0  }
   0x3 LB: > { %s1017_s25 = sadd.s32 4294967295, %s950_s24   ;;  %s696_s26 = sadd.s32 4294967294, %s950_s24   ;;  %s950_s24 = sphi %s1002_s24, %s1266_s24   ;;  %s946_s23 = sphi %s1000_s23, %s1265_s23   ;;  %s942_s22 = sphi %s998_s22, %s1264_s22   ;;  %s938_s21 = sphi %s996_s21, %s1263_s21  }
   0x4   : > { %s1021_s27 = sadd.s32 1, %s950_s24   ;;  %s157_s28 = sadd.s32 1, %s946_s23 }
   0x5   : > { %s154_s29 = ssub.s32 %s950_s24, %s1021_s27  ;;  %p167_p0 = scmp.ne.s32.totalorder %s946_s23, %s942_s22 }
   0x6   : > { %p155_p1 = scmp.eq.s32.totalorder %s154_s29, 0  ;;  %p168_p2 = scmp.eq.s32.totalorder %s1017_s25, 1 }
   0x7   : > { %p173_p3 = scmp.ne.s32.totalorder %s942_s22, %s938_s21  ;;  %p174_p4 = scmp.eq.s32.totalorder %s696_s26, 1 }
   0x8   : > { %s1032_s30 = scalar_select %p155_p1, %s946_s23, %s157_s28  }
   0x9   : > { %p1034_p5 = por %p168_p2, %p167_p0  ;;  %p1038_p6 = por %p174_p4, %p173_p3 }
   0xa   : > { %p699_p7 = scmp.ge.s32.totalorder %s950_s24, 1  ;;  %p213_p8 = scmp.lt.s32.totalorder %s950_s24, 3 }
   0xc   : > { %p214_p9 = pnand %p699_p7, %p213_p8 }
   0xd   : > { %v247_v0 = vld [vmem:[%s1255_s1 + $0x10] sm:$0xff] (!%p214_p9)  ;;  %v245_v1 = vld [vmem:[%s1255_s1] sm:$0xff] (!%p214_p9)  ;;  %v952_v2 = vmov (!%p214_p9), 0   ;;  %v248_v3 = vld [vmem:[%s1255_s1 + $0x18] sm:$0xff] (!%p214_p9)  ;;  %vm363_vm0 = vcmask (!%p214_p9), 523264   ;;  %p241_p10 = scmp.lt.s32.totalorder (!%p214_p9), %s1017_s25, 1  ;;  %v294_v21 = vlaneseq (!%p214_p9) }
   0xe   : > { %217 = sbr.rel (%p214_p9) target bundleno = 650 (0x28a), region = 44  ;;  %871 = vset.pattern.permute.xlu1 (!%p214_p9), %v952_v2  ;;  %870 = vset.pattern.permute.xlu0 (!%p214_p9), %v952_v2  ;;  %v246_v4 = vld [vmem:[%s1255_s1 + $0x8] sm:$0xff] (!%p214_p9)  ;;  %v249_v6 = vld [vmem:[%s1255_s1 + $0x20] sm:$0xff] (!%p214_p9)  ;;  %v252_v7 = vld [vmem:[%s1255_s1 + $0x38] sm:$0xff] (!%p214_p9)  ;;  %v953_v53 = vmov (!%p214_p9), 0.0|0.0   ;;  %vm954_vm1 = vmmov (!%p214_p9), 0  }
   0xf   : > { %265 = vperm.xlu1 (!%p214_p9), %871, %v247_v0   ;;  %255 = vperm.xlu0 (!%p214_p9), %870, %v245_v1   ;;  %v250_v5 = vld [vmem:[%s1255_s1 + $0x28] sm:$0xff] (!%p214_p9)  ;;  %v251_v8 = vld [vmem:[%s1255_s1 + $0x30] sm:$0xff] (!%p214_p9)  ;;  %v315_v10 = vld [vmem:[%s1257_s3] sm:$0xff] (!%p214_p9)  ;;  %v295_v22 = vshrl.u32 (!%p214_p9), %v294_v21, 7  ;;  %v955_v54 = vmov (!%p214_p9), 0.0   ;;  %s711_s17 = sshll.u32 (!%p214_p9), %s1017_s25, 7 }
  0x10   : > { %v316_v9 = vld [vmem:[%s1257_s3 + $0x8] sm:$0xff] (!%p214_p9)  ;;  %v318_v11 = vld [vmem:[%s1257_s3 + $0x18] sm:$0xff] (!%p214_p9)  ;;  %v317_v12 = vld [vmem:[%s1257_s3 + $0x10] sm:$0xff] (!%p214_p9)  ;;  %810 = vmatprep.subr.bf16.mxu1 (!%p214_p9), %v953_v53  ;;  %785 = vmatprep.mubr.msk.f32.mxu1 (!%p214_p9), %vm954_vm1, %v955_v54  ;;  %s1208_s20 = scalar_lea.hbm (!%p214_p9), %s1260_s6, %s711_s17 }
  0x11   : > { %v320_v13 = vld [vmem:[%s1257_s3 + $0x28] sm:$0xff] (!%p214_p9)  ;;  %v319_v14 = vld [vmem:[%s1257_s3 + $0x20] sm:$0xff] (!%p214_p9)  ;;  %v322_v16 = vld [vmem:[%s1257_s3 + $0x38] sm:$0xff] (!%p214_p9)  ;;  %v296_v23 = vsub.s32 (!%p214_p9), 0, %v295_v22 }
  0x12   : > { %v307_v15 = vld [vmem:[%s1256_s2] sm:$0xff] (!%p214_p9)  ;;  %v321_v17 = vld [vmem:[%s1257_s3 + $0x30] sm:$0xff] (!%p214_p9)  ;;  %v513_v18 = vld [vmem:[%s1259_s5 + $0x8] sm:$0xff] (!%p214_p9) }
  0x13   : > { %270 = vperm.xlu1 (!%p214_p9), %871, %v248_v3   ;;  %260 = vperm.xlu0 (!%p214_p9), %870, %v246_v4   ;;  %v512_v19 = vld [vmem:[%s1259_s5] sm:$0xff] (!%p214_p9)  ;;  %v514_v20 = vld [vmem:[%s1259_s5 + $0x10] sm:$0x3f] (!%p214_p9)  ;;  %v308_v46 = vld [vmem:[%s1256_s2 + $0x8] sm:$0xff] (!%p214_p9) }
  0x14   : > { %757 = vmatprep.mubr.msk.f32.mxu0 (!%p214_p9), %vm363_vm0, %v307_v15  ;;  %v309_v47 = vld [vmem:[%s1256_s2 + $0x10] sm:$0xff] (!%p214_p9)  ;;  %v310_v48 = vld [vmem:[%s1256_s2 + $0x18] sm:$0xff] (!%p214_p9)  ;;  %v311_v49 = vld [vmem:[%s1256_s2 + $0x20] sm:$0xff] (!%p214_p9) }
  0x15   : > { %s242_s19 = scalar_select %p241_p10, %s1017_s25, 1  ;;  %v312_v50 = vld [vmem:[%s1256_s2 + $0x28] sm:$0xff]  ;;  %v313_v51 = vld [vmem:[%s1256_s2 + $0x30] sm:$0xff]  ;;  %v314_v52 = vld [vmem:[%s1256_s2 + $0x38] sm:$0xff] }
  0x17   : > { %280 = vperm.xlu1 %871, %v250_v5   ;;  %275 = vperm.xlu0 %870, %v249_v6   ;;  %s243_s28 = scalar_lea.vmem %s1254_s0, %s242_s19 }
  0x18   : > { %v244_v24 = vld [vmem:[%s243_s28] sm:$0x1]  ;;  %s238_s28 = sand.u32 1, %s942_s22  }
  0x19   : > { %v297_v27 = vrot.slane %v244_v24, %v296_v23  ;;  %s822_s29 = smul.u32 24, %s238_s28  ;;  %s1213_s26 = scalar_lea.sflag [#allocation3], %s238_s28 }
  0x1b   : > { %290 = vperm.xlu1 %871, %v252_v7   ;;  %285 = vperm.xlu0 %870, %v251_v8   ;;  %s1168_s9 = scalar_lea.vmem [#allocation2], %s822_s29  ;;  %s957_s29 = smov [#allocation2]  }
  0x1c   : > { %620 = vst [vmem:[%s1168_s9 + $0x1] sm:$0x1] %v244_v24  ;;  %s637_s16 = sshll.u32 %s1168_s9, 4  ;;  %s892_s10 = sshll.u32 %s957_s29, 4  ;;  %s1202_s16 = int_to_ptr.vmem [resolvable:$true] %s637_s16  ;;  %s893_s10 = int_to_ptr.vmem [resolvable:$false] %s892_s10 }
  0x1d   : > { %s888_s25 = scalar_lea.vmem %s1202_s16, 384  ;;  %s894_s11 = scalar_lea.vmem %s893_s10, 768 }
  0x1e   : > { %p889_p11 = scmp.ne.s32.totalorder %s1202_s16, %s888_s25  ;;  %p895_p0 = scmp.lt.s32.totalorder %s1202_s16, %s893_s10 }
  0x1f   : > { %330 = vperm.xlu1 %871, %v316_v9   ;;  %325 = vperm.xlu0 %870, %v315_v10   ;;  %p896_p1 = scmp.lt.s32.totalorder %s894_s11, %s888_s25 }
  0x20   : > { %p890_p12 = pnand %p889_p11, %p1034_p5 }
  0x21   : > { %p897_p2 = por %p896_p1, %p895_p0 }
  0x22   : > { %p891_p13 = pneg %p890_p12 }
  0x23   : > { %340 = vperm.xlu1 %871, %v318_v11   ;;  %335 = vperm.xlu0 %870, %v317_v12  }
  0x24   : > { %p898_p3 = pnand %p897_p2, %p891_p13 }
  0x27   : > { %350 = vperm.xlu1 %871, %v320_v13   ;;  %345 = vperm.xlu0 %870, %v319_v14  }
  0x2b   : > { %360 = vperm.xlu1 %871, %v322_v16   ;;  %355 = vperm.xlu0 %870, %v321_v17  }
  0x2f   : > { %522 = vperm.xlu1 %871, %v513_v18   ;;  %517 = vperm.xlu0 %870, %v512_v19  }
  0x33   : > { %527 = vperm.xlu0 %870, %v514_v20  }
  0x8e   : > { %v266_v25 = vpop.permute.xlu1 %265  ;;  %v256_v26 = vpop.permute.xlu0 %255 }
  0x8f   : > { %v1110_v30 = vmul.f32 %v297_v27, %v266_v25  ;;  %v1112_v31 = vmul.f32 %v297_v27, %v256_v26 }
  0x92   : > { %v271_v28 = vpop.permute.xlu1 %270  ;;  %v261_v29 = vpop.permute.xlu0 %260 }
  0x93   : > { %v1114_v32 = vmul.f32 %v297_v27, %v271_v28  ;;  %v1116_v33 = vmul.f32 %v297_v27, %v261_v29 }
  0x95   : > { %v794_v34 = vpack.c.bf16 %v1116_v33, %v1112_v31  ;;  %v798_v37 = vpack.c.bf16 %v1114_v32, %v1110_v30 }
  0x96   : > { %v281_v35 = vpop.permute.xlu1 %280  ;;  %v276_v36 = vpop.permute.xlu0 %275 }
  0x97   : > { %v1122_v38 = vmul.f32 %v297_v27, %v281_v35  ;;  %v1124_v39 = vmul.f32 %v297_v27, %v276_v36  ;;  %795 = vmatprep.subr.bf16.mxu0 %v794_v34  ;;  %v509_v35 = vld [vmem:[%s1258_s4] sm:$0xff]  ;;  %v510_v36 = vld [vmem:[%s1258_s4 + $0x8] sm:$0xff] }
  0x98   : > { %797 = vmatpush3.bf16.msra.mxu0 %v794_v34 }
  0x99   : > { %799 = vmatprep.subr.bf16.mxu0 %v798_v37  ;;  %v802_v42 = vpack.c.bf16 %v1122_v38, %v1124_v39 }
  0x9a   : > { %v291_v40 = vpop.permute.xlu1 %290  ;;  %v286_v41 = vpop.permute.xlu0 %285 }
  0x9b   : > { %v1128_v43 = vmul.f32 %v297_v27, %v291_v40  ;;  %v1130_v44 = vmul.f32 %v297_v27, %v286_v41 }
  0x9c   : > { %801 = vmatpush3.bf16.msra.mxu0 %v798_v37  ;;  %v511_v37 = vld [vmem:[%s1258_s4 + $0x10] sm:$0x3f] }
  0x9d   : > { %803 = vmatprep.subr.bf16.mxu0 %v802_v42  ;;  %v806_v45 = vpack.c.bf16 %v1128_v43, %v1130_v44 }
  0x9e   : > { %v331_v55 = vpop.permute.xlu1 %330  ;;  %v326_v56 = vpop.permute.xlu0 %325 }
  0xa0   : > { %805 = vmatpush3.bf16.msra.mxu0 %v802_v42 }
  0xa1   : > { %807 = vmatprep.subr.bf16.mxu0 %v806_v45 }
  0xa2   : > { %v341_v57 = vpop.permute.xlu1 %340  ;;  %v336_v59 = vpop.permute.xlu0 %335 }
  0xa4   : > { %809 = vmatpush3.bf16.msra.mxu0 %v806_v45 }
  0xa6   : > { %v351_v2 = vpop.permute.xlu1 %350  ;;  %v346_v4 = vpop.permute.xlu0 %345 }
  0xa7   : > { %758 = vmatmul.mubr.msk.f32.vlgmr.msra.gmra.mrb[0].mxu0 %vm363_vm0, %v308_v46 }
  0xa8   : > { %760 = vmatprep.mubr.msk.f32.mxu0 %vm363_vm0, %v309_v47 }
  0xaa   : > { %v361_v9 = vpop.permute.xlu1 %360  ;;  %v356_v12 = vpop.permute.xlu0 %355 }
  0xab   : > { %761 = vmatmul.mubr.msk.f32.gmra.mrb[2].mxu0 %vm363_vm0, %v310_v48 }
  0xac   : > { %763 = vmatprep.mubr.msk.f32.mxu0 %vm363_vm0, %v311_v49 }
  0xaf   : > { %764 = vmatmul.mubr.msk.f32.gmra.mrb[4].mxu0 %vm363_vm0, %v312_v50 }
  0xb0   : > { %766 = vmatprep.mubr.msk.f32.mxu0 %vm363_vm0, %v313_v51 }
  0xb3   : > { %767 = vmatmul.mubr.msk.f32.gmra.mrb[6].mxu0 %vm363_vm0, %v314_v52 }
 0x17a   : > { %v759_v58 = vpop.f32.mrb[0].mxu0 }
 0x17b   : > { %v460_v60 = vadd.f32 %v759_v58, %v331_v55  ;;  %v454_v61 = vpop.f32.mrb[1].mxu0 }
 0x17c   : > { %v455_v62 = vadd.f32 %v454_v61, %v326_v56 }
 0x17d   : > { %872 = vtanh.f32 %v460_v60 }
 0x17e   : > { %874 = vtanh.f32 %v455_v62  ;;  %v762_v63 = vpop.f32.mrb[2].mxu0 }
 0x17f   : > { %v470_v0 = vadd.f32 %v762_v63, %v341_v57  ;;  %v464_v1 = vpop.f32.mrb[3].mxu0 }
 0x180   : > { %v465_v3 = vadd.f32 %v464_v1, %v336_v59 }
 0x181   : > { %876 = vtanh.f32 %v470_v0 }
 0x182   : > { %878 = vtanh.f32 %v465_v3  ;;  %v765_v5 = vpop.f32.mrb[4].mxu0 }
 0x183   : > { %v480_v6 = vadd.f32 %v765_v5, %v351_v2  ;;  %v474_v7 = vpop.f32.mrb[5].mxu0 }
 0x184   : > { %v475_v8 = vadd.f32 %v474_v7, %v346_v4 }
 0x185   : > { %880 = vtanh.f32 %v480_v6 }
 0x186   : > { %882 = vtanh.f32 %v475_v8  ;;  %v768_v10 = vpop.f32.mrb[6].mxu0 }
 0x187   : > { %v873_v11 = vpop.eup %872  ;;  %v490_v13 = vadd.f32 %v768_v10, %v361_v9  ;;  %v484_v14 = vpop.f32.mrb[7].mxu0 }
 0x188   : > { %v875_v15 = vpop.eup %874  ;;  %v485_v16 = vadd.f32 %v484_v14, %v356_v12  ;;  %v502_v17 = vadd.f32 %v873_v11, %v1116_v33 }
 0x189   : > { %884 = vtanh.f32 %v490_v13  ;;  %v501_v18 = vadd.f32 %v875_v15, %v1112_v31 }
 0x18a   : > { %886 = vtanh.f32 %v485_v16 }
 0x18b   : > { %v877_v19 = vpop.eup %876  ;;  %v811_v20 = vpack.c.bf16 %v502_v17, %v501_v18 }
 0x18c   : > { %v879_v21 = vpop.eup %878  ;;  %v504_v22 = vadd.f32 %v877_v19, %v1114_v32 }
 0x18d   : > { %812 = vmatpush3.bf16.msra.mxu1 %v811_v20  ;;  %v503_v23 = vadd.f32 %v879_v21, %v1110_v30 }
 0x18e   : > { %813 = vmatprep.subr.bf16.mxu1 %v953_v53 }
 0x18f   : > { %v881_v24 = vpop.eup %880  ;;  %v814_v25 = vpack.c.bf16 %v504_v22, %v503_v23 }
 0x190   : > { %v883_v26 = vpop.eup %882  ;;  %v506_v27 = vadd.f32 %v881_v24, %v1122_v38  ;;  %v956_v38 = vmov 1.0  }
 0x191   : > { %815 = vmatpush3.bf16.msra.mxu1 %v814_v25  ;;  %v505_v28 = vadd.f32 %v883_v26, %v1124_v39  ;;  %619 = vst [vmem:[%s1168_s9] sm:$0x1] %v956_v38  ;;  %v518_v39 = vpop.permute.xlu0 %517 }
 0x192   : > { %816 = vmatprep.subr.bf16.mxu1 %v953_v53 }
 0x193   : > { %v885_v29 = vpop.eup %884  ;;  %v817_v31 = vpack.c.bf16 %v506_v27, %v505_v28 }
 0x194   : > { %v887_v33 = vpop.eup %886  ;;  %v508_v32 = vadd.f32 %v885_v29, %v1128_v43  ;;  %v523_v43 = vpop.permute.xlu1 %522 }
 0x195   : > { %818 = vmatpush3.bf16.msra.mxu1 %v817_v31  ;;  %v507_v30 = vadd.f32 %v887_v33, %v1130_v44  ;;  %v528_v47 = vpop.permute.xlu0 %527 }
 0x196   : > { %819 = vmatprep.subr.bf16.mxu1 %v953_v53 }
 0x197   : > { %v820_v34 = vpack.c.bf16 %v508_v32, %v507_v30 }
 0x199   : > { %821 = vmatpush3.bf16.msra.mxu1 %v820_v34 }
 0x19c   : > { %786 = vmatmul.mubr.msk.f32.vlgmr.msra.gmra.mrb[0].mxu1 %vm363_vm0, %v509_v35 }
 0x19d   : > { %788 = vmatprep.mubr.msk.f32.mxu1 %vm954_vm1, %v955_v54 }
 0x1a0   : > { %789 = vmatmul.mubr.msk.f32.gmra.mrb[2].mxu1 %vm363_vm0, %v510_v36 }
 0x1a1   : > { %791 = vmatprep.mubr.msk.f32.mxu1 %vm954_vm1, %v955_v54 }
 0x1a4   : > { %792 = vmatmul.mubr.msk.f32.gmra.mrb[4].mxu1 %vm363_vm0, %v511_v37 }
 0x26f   : > { %v605_v40 = vpop.f32.mrb[0].mxu1 }
 0x270   : > { %v606_v41 = vadd.f32 %v605_v40, %v518_v39  ;;  %v787_v42 = vpop.f32.mrb[1].mxu1 }
 0x272   : > { %621 = vst [vmem:[%s1168_s9 + $0x2] sm:$0xff] %v606_v41 }
 0x273   : > { %v610_v44 = vpop.f32.mrb[2].mxu1 }
 0x274   : > { %v611_v45 = vadd.f32 %v610_v44, %v523_v43  ;;  %v790_v46 = vpop.f32.mrb[3].mxu1 }
 0x276   : > { %622 = vst [vmem:[%s1168_s9 + $0xa] sm:$0xff] %v611_v45 }
 0x277   : > { %v615_v48 = vpop.f32.mrb[4].mxu1 }
 0x278   : > { %v616_v49 = vadd.f32 %v615_v48, %v528_v47  ;;  %v793_v50 = vpop.f32.mrb[5].mxu1 }
 0x27a   : > { %623 = vst [vmem:[%s1168_s9 + $0x12] sm:$0x3f] %v616_v49 }
 0x27b   : > { %901 = shalt.err (!%p898_p3)
}
 0x27c   : > { %s902_s28 = scalar_lea.hbm %s1208_s20, 384  ;;  %s906_s13 = scalar_lea.hbm %s1260_s6, 768 }
 0x27d   : > { %p903_p4 = scmp.ne.s32.totalorder %s1208_s20, %s902_s28  ;;  %p907_p9 = scmp.lt.u32.totalorder %s1208_s20, %s1260_s6 }
 0x27e   : > { %p908_p10 = scmp.lt.u32.totalorder %s906_s13, %s902_s28  ;;  %p910_p12 = scmp.lt.u32.totalorder %s902_s28, %s1208_s20 }
 0x27f   : > { %p904_p7 = pnand %p903_p4, %p1034_p5 }
 0x280   : > { %p909_p11 = por %p908_p10, %p907_p9 }
 0x281   : > { %p905_p8 = pneg %p904_p7 }
 0x282   : > { %p911_p13 = por %p910_p12, %p909_p11 }
 0x284   : > { %p912_p0 = pnand %p911_p13, %p905_p8 }
 0x286   : > { %915 = shalt.err (!%p912_p0)
}
 0x287   : > { %s958_s17 = smov 128   ;;  %s959_s18 = smov 256  }
 0x288   : > { %s960_s19 = smov 8  }
 0x289   : > { %823 = dma.vmem_to_hbm [thread:$0]  (%p1034_p5), %s1202_s16, 384, %s1208_s20, %s1213_s26, %s958_s17, %s959_s18, %s960_s19  }
 0x28a PF: > { %p829_p1 = scmp.ge.s32.totalorder %s950_s24, 2  ;;  %s652_s25 = sand.u32 1, %s938_s21  }
 0x28b   : > { %s653_s29 = scalar_lea.sflag [#allocation3], %s652_s25 }
 0x28c   : > { %p826_p2 = pnand %p829_p1, %p1038_p6 }
 0x28e   : > { %933 = dma.done.wait (!%p826_p2), %s653_s29, 384  }
 0x28f   : > { %935 = vsyncadd (!%p826_p2), %s653_s29, 4294966912  ;;  %p16_p3 = scmp.ge.s32.totalorder %s1021_s27, 4   ;;  %s1263_s21 = smov %s942_s22 }
 0x290   : > { %s1264_s22 = smov %s946_s23  ;;  %s1265_s23 = smov %s1032_s30 }
 0x291   : > { %s1266_s24 = smov %s1021_s27  ;;  %18 = sbr.rel (!%p16_p3) target bundleno = 3 (0x3), region = 79 }
 0x298   :  { %658 = vsyncpa [#allocation3], 1 }
 0x299   :  { %660 = vsyncpa [#allocation3 + $0x1], 1 }

</bundles_post_ra>
